<compile_context>
chip_gen: v6e
topology: v6e:2x2x1
jax: 0.10.0
libtpu: 0.0.40
codegen_flags: <defaults>
</compile_context>

<pallas_src>
from typing import List

import numpy as np
import jax
import jax.numpy as jnp
from jax.experimental import pallas as pl
from jax.experimental.pallas import tpu as pltpu


# ----------------------------------------------------------------------------
# Host-side helpers: align_corners bilinear resize as dense matrices.
# ----------------------------------------------------------------------------
def _upsample_matrix_np(n_in: int, n_out: int) -> np.ndarray:
    """(n_out, n_in) matrix for 1-D bilinear resize with align_corners=True."""
    if n_out == 1:
        src = np.zeros((1,), dtype=np.float64)
    else:
        src = np.arange(n_out, dtype=np.float64) * (n_in - 1) / (n_out - 1)
    i0 = np.clip(np.floor(src).astype(np.int64), 0, n_in - 1)
    i1 = np.minimum(i0 + 1, n_in - 1)
    frac = (src - i0).astype(np.float32)
    m = np.zeros((n_out, n_in), dtype=np.float32)
    rows = np.arange(n_out)
    m[rows, i0] += 1.0 - frac
    m[rows, i1] += frac
    return m


def _kron_upsample_T_np(H: int, W: int, scale: int) -> np.ndarray:
    """Pre-transposed Kronecker upsample matrix, shape (H*W, Ho*Wo)."""
    uh = _upsample_matrix_np(H, H * scale)          # (Ho, H)
    uw = _upsample_matrix_np(W, W * scale)          # (Wo, W)
    return np.ascontiguousarray(np.kron(uh, uw).T)  # (H*W, Ho*Wo)


# ----------------------------------------------------------------------------
# Fused Pallas kernel: all stages + whole batch, 2-way column-split grid.
# ----------------------------------------------------------------------------
def _fused_decoder_call(xs_stacked, wcat, utcat, bcat, stage_dims, N, O, HoWo):
    """xs_stacked[s]: (N*C_s, HW_s) f32       (free reshape of NCHW input)
       wcat : (N*O, sum_s N*C_s)  block-diag conv weights, concat along cols
       utcat: (sum_s HW_s, HoWo)  per-stage upsample matrices, concat on rows
       bcat : (N*O, S)            per-stage biases tiled over batch
       returns (S, N*O, HoWo) float32."""
    S = len(stage_dims)
    NO = N * O
    # 2-way column split keeps a "parallel" axis for v7x's two TensorCores
    # while costing single-TC chips only one extra (cheap) grid step.
    col_split = 2 if HoWo % 256 == 0 else 1
    tile = HoWo // col_split

    w_offs, r_offs = [0], [0]
    for C, HW in stage_dims:
        w_offs.append(w_offs[-1] + N * C)
        r_offs.append(r_offs[-1] + HW)

    def kernel(*refs):
        x_refs = refs[:S]
        w_ref, ut_ref, b_ref = refs[S:S + 3]
        o_ref = refs[S + 3]                                   # (S, NO, tile)
        for s, (C, HW) in enumerate(stage_dims):
            # Conv (channel mixing) first, batch folded into the M dim.
            wblk = w_ref[:, w_offs[s]:w_offs[s + 1]]          # (NO, N*C)
            z = jnp.dot(wblk, x_refs[s][...],
                        preferred_element_type=jnp.float32)   # (NO, HW)
            # Bilinear upsample as a dense matmul against this grid step's
            # column half of the kron matrix (sublane-aligned row slice).
            ut = ut_ref[r_offs[s]:r_offs[s + 1], :]           # (HW, tile)
            y = jnp.dot(z, ut,
                        preferred_element_type=jnp.float32)   # (NO, tile)
            # Bias (constant over space => unaffected by the upsample).
            o_ref[s] = (y + b_ref[:, s:s + 1]).astype(o_ref.dtype)

    # Invariant operands (constant index_map) are fetched once across steps.
    in_specs = [pl.BlockSpec((N * C, HW), lambda j: (0, 0))
                for C, HW in stage_dims]
    in_specs += [
        pl.BlockSpec((NO, w_offs[-1]), lambda j: (0, 0)),     # wcat
        pl.BlockSpec((r_offs[-1], tile), lambda j: (0, j)),   # utcat (col half)
        pl.BlockSpec((NO, S), lambda j: (0, 0)),              # bcat
    ]
    out_spec = pl.BlockSpec((S, NO, tile), lambda j: (0, 0, j))

    flops = sum(2 * NO * N * C * HW for C, HW in stage_dims)          # conv
    flops += sum(2 * NO * HW * HoWo for _, HW in stage_dims)          # upsample
    bytes_accessed = 4 * (sum(int(x.size) for x in xs_stacked)
                          + int(wcat.size) + int(utcat.size) + int(bcat.size)
                          + S * NO * HoWo)

    return pl.pallas_call(
        kernel,
        out_shape=jax.ShapeDtypeStruct((S, NO, HoWo), jnp.float32),
        grid_spec=pltpu.PrefetchScalarGridSpec(
            num_scalar_prefetch=0,
            grid=(col_split,),
            in_specs=in_specs,
            out_specs=out_spec,
        ),
        compiler_params=pltpu.CompilerParams(
            dimension_semantics=("parallel",)),
        cost_estimate=pl.CostEstimate(
            flops=flops, transcendentals=0, bytes_accessed=bytes_accessed),
    )(*xs_stacked, wcat, utcat, bcat)


# ----------------------------------------------------------------------------
# Module wrapper (parameters initialized in-script, Conv2d-compatible shapes).
# ----------------------------------------------------------------------------
class SegFormerDecoderPallas:
    """JAX/Pallas port of SegFormerDecoder (NCHW in, NCHW out)."""

    def __init__(self, out_channels: int, widths: List[int],
                 scale_factors: List[int], key):
        self.out_channels = out_channels
        self.widths = list(widths)
        self.scale_factors = list(scale_factors)
        self.params = []          # PyTorch-layout params: (O, C, 1, 1), (O,)
        for c_in in widths:
            key, kw, kb = jax.random.split(key, 3)
            bound = 1.0 / (c_in ** 0.5)
            w = jax.random.uniform(kw, (out_channels, c_in, 1, 1),
                                   jnp.float32, -bound, bound)
            b = jax.random.uniform(kb, (out_channels,),
                                   jnp.float32, -bound, bound)
            self.params.append((w, b))
        self._cache = {}          # (N, feat_shapes) -> consolidated operands

    def _operands(self, N, feat_shapes):
        cache_key = (N, tuple(feat_shapes))
        if cache_key in self._cache:
            return self._cache[cache_key]
        O = self.out_channels
        eye_n = jnp.eye(N, dtype=jnp.float32)
        stage_dims, ho_wo = [], None
        wblks, bcols, uts = [], [], []
        for (w4, b), (C, H, W), s in zip(self.params, feat_shapes,
                                         self.scale_factors):
            stage_dims.append((C, H * W))
            out_hw = (H * s, W * s)
            if ho_wo is None:
                ho_wo = out_hw
            # SegFormer decoder stages all upsample to a common spatial size.
            assert out_hw == ho_wo, "fused decoder expects a common output size"
            w2 = w4.reshape(O, C)
            wblks.append(jnp.kron(eye_n, w2))                   # (N*O, N*C)
            bcols.append(jnp.tile(b.reshape(O, 1), (N, 1)))     # (N*O, 1)
            uts.append(_kron_upsample_T_np(H, W, s))            # (HW, Ho*Wo)
        ops = (tuple(stage_dims),
               jnp.concatenate(wblks, axis=1),                  # (N*O, sum NC)
               jnp.asarray(np.concatenate(uts, axis=0)),        # (sum HW, HoWo)
               jnp.concatenate(bcols, axis=1),                  # (N*O, S)
               ho_wo)
        self._cache[cache_key] = ops
        return ops

    def __call__(self, features):
        N = features[0].shape[0]
        feat_shapes = tuple(x.shape[1:] for x in features)
        stage_dims, wcat, utcat, bcat, (Ho, Wo) = self._operands(N, feat_shapes)
        # Free (metadata-only) reshape: (N, C, H, W) -> (N*C, H*W); channels
        # become the conv contraction rows, flattened space stays in lanes.
        xs = [x.astype(jnp.float32).reshape(N * c, hw)
              for x, (c, hw) in zip(features, stage_dims)]
        out = _fused_decoder_call(xs, wcat, utcat, bcat, list(stage_dims),
                                  N, self.out_channels, Ho * Wo)
        return [out[s].reshape(N, self.out_channels, Ho, Wo)
                for s in range(len(features))]


# ----------------------------------------------------------------------------
# Pure-JAX reference (PyTorch op order: upsample first, then 1x1 conv).
# ----------------------------------------------------------------------------
def _reference_stage(x_nchw, weight, bias, scale_factor: int):
    N, C, H, W = x_nchw.shape
    O = weight.shape[0]
    uh = jnp.asarray(_upsample_matrix_np(H, H * scale_factor))
    uw = jnp.asarray(_upsample_matrix_np(W, W * scale_factor))
    up = jnp.einsum("oh,nchw->ncow", uh, x_nchw)
    up = jnp.einsum("pw,ncow->ncop", uw, up)                  # (N, C, Ho, Wo)
    y = jnp.einsum("kc,ncop->nkop", weight.reshape(O, C), up)
    return y + bias[None, :, None, None]


if __name__ == "__main__":
    key = jax.random.PRNGKey(0)

    out_channels = 16
    widths = [4, 8, 16]
    scale_factors = [2, 4, 8]
    # Feature pyramid (NCHW); all stages upsample to 32x32.
    feat_shapes = [(2, 4, 16, 16), (2, 8, 8, 8), (2, 16, 4, 4)]

    key, kdec = jax.random.split(key)
    decoder = SegFormerDecoderPallas(out_channels, widths, scale_factors, kdec)

    features = []
    for shp in feat_shapes:
        key, kf = jax.random.split(key)
        features.append(jax.random.normal(kf, shp, jnp.float32))

    outs = decoder(features)
    outs = [jax.block_until_ready(o) for o in outs]

    # Verify against a pure-JAX reference of the same semantics.
    ok = True
    for feat, (w, b), s, o in zip(features, decoder.params,
                                  decoder.scale_factors, outs):
        ref = _reference_stage(feat, w, b, s)
        if o.shape != ref.shape or not jnp.allclose(o, ref, atol=1e-4, rtol=1e-4):
            ok = False

    print("KERNEL_OK" if ok else "KERNEL_MISMATCH")
</pallas_src>

<mosaic_0001>
module attributes {stable_mosaic.version = 11 : i64} {
  func.func @kernel(%arg0: i32, %arg1: memref<8x256xf32, #tpu.memory_space<vmem>>, %arg2: memref<16x64xf32, #tpu.memory_space<vmem>>, %arg3: memref<32x16xf32, #tpu.memory_space<vmem>>, %arg4: memref<32x56xf32, #tpu.memory_space<vmem>>, %arg5: memref<336x512xf32, #tpu.memory_space<vmem>>, %arg6: memref<32x3xf32, #tpu.memory_space<vmem>>, %arg7: memref<3x32x512xf32, #tpu.memory_space<vmem>>) attributes {dimension_semantics = [#tpu.dimension_semantics<parallel>], iteration_bounds = array<i64: 2>, scalar_prefetch = 0 : i64, scratch_operands = 0 : i64, tpu.core_type = #tpu.core_type<tc>, window_params = [{pipeline_mode = #tpu.pipeline_mode<synchronous>, transform_indices = @transform_0, window_bounds = array<i64: 8, 256>}, {pipeline_mode = #tpu.pipeline_mode<synchronous>, transform_indices = @transform_1, window_bounds = array<i64: 16, 64>}, {pipeline_mode = #tpu.pipeline_mode<synchronous>, transform_indices = @transform_2, window_bounds = array<i64: 32, 16>}, {pipeline_mode = #tpu.pipeline_mode<synchronous>, transform_indices = @transform_3, window_bounds = array<i64: 32, 56>}, {transform_indices = @transform_4, window_bounds = array<i64: 336, 512>}, {pipeline_mode = #tpu.pipeline_mode<synchronous>, transform_indices = @transform_5, window_bounds = array<i64: 32, 3>}, {transform_indices = @transform_6, window_bounds = array<i64: 3, 32, 512>}]} {
    %c0 = arith.constant 0 : index
    %c0_0 = arith.constant 0 : index
    %0 = vector.load %arg4[%c0, %c0_0] : memref<32x56xf32, #tpu.memory_space<vmem>>, vector<32x8xf32>
    %c0_1 = arith.constant 0 : index
    %c0_2 = arith.constant 0 : index
    %1 = vector.load %arg1[%c0_1, %c0_2] : memref<8x256xf32, #tpu.memory_space<vmem>>, vector<8x256xf32>
    %cst = arith.constant dense<0.000000e+00> : vector<32x256xf32>
    %2 = tpu.matmul %0, %1, %cst {dimension_numbers = #tpu.dot_dimension_numbers<[1], [0], [0], [1], [0, 0, 1, 1], [], []>} : vector<32x8xf32>, vector<8x256xf32>, vector<32x256xf32> -> vector<32x256xf32>
    %c0_3 = arith.constant 0 : index
    %c0_4 = arith.constant 0 : index
    %3 = vector.load %arg5[%c0_3, %c0_4] : memref<336x512xf32, #tpu.memory_space<vmem>>, vector<256x512xf32>
    %cst_5 = arith.constant dense<0.000000e+00> : vector<32x512xf32>
    %4 = tpu.matmul %2, %3, %cst_5 {dimension_numbers = #tpu.dot_dimension_numbers<[1], [0], [0], [1], [0, 0, 1, 1], [], []>} : vector<32x256xf32>, vector<256x512xf32>, vector<32x512xf32> -> vector<32x512xf32>
    %c0_6 = arith.constant 0 : index
    %c0_7 = arith.constant 0 : index
    %5 = vector.load %arg6[%c0_6, %c0_7] : memref<32x3xf32, #tpu.memory_space<vmem>>, vector<32x1xf32>
    %6 = vector.broadcast %5 : vector<32x1xf32> to vector<32x512xf32>
    %7 = arith.addf %4, %6 : vector<32x512xf32>
    %c0_8 = arith.constant 0 : index
    %c0_9 = arith.constant 0 : index
    %c0_10 = arith.constant 0 : index
    %8 = vector.load %arg7[%c0_8, %c0_9, %c0_10] : memref<3x32x512xf32, #tpu.memory_space<vmem>>, vector<1x32x512xf32>
    %9 = vector.shape_cast %8 : vector<1x32x512xf32> to vector<32x512xf32>
    %10 = vector.shape_cast %7 : vector<32x512xf32> to vector<1x32x512xf32>
    tpu.vector_store %arg7[%c0_8, %c0_9, %c0_10], %10 {strides = array<i32>} : memref<3x32x512xf32, #tpu.memory_space<vmem>>, vector<1x32x512xf32>,
    %c0_11 = arith.constant 0 : index
    %c8 = arith.constant 8 : index
    %11 = vector.load %arg4[%c0_11, %c8] : memref<32x56xf32, #tpu.memory_space<vmem>>, vector<32x16xf32>
    %c0_12 = arith.constant 0 : index
    %c0_13 = arith.constant 0 : index
    %12 = vector.load %arg2[%c0_12, %c0_13] : memref<16x64xf32, #tpu.memory_space<vmem>>, vector<16x64xf32>
    %cst_14 = arith.constant dense<0.000000e+00> : vector<32x64xf32>
    %13 = tpu.matmul %11, %12, %cst_14 {dimension_numbers = #tpu.dot_dimension_numbers<[1], [0], [0], [1], [0, 0, 1, 1], [], []>} : vector<32x16xf32>, vector<16x64xf32>, vector<32x64xf32> -> vector<32x64xf32>
    %c256 = arith.constant 256 : index
    %c0_15 = arith.constant 0 : index
    %14 = vector.load %arg5[%c256, %c0_15] : memref<336x512xf32, #tpu.memory_space<vmem>>, vector<64x512xf32>
    %cst_16 = arith.constant dense<0.000000e+00> : vector<32x512xf32>
    %15 = tpu.matmul %13, %14, %cst_16 {dimension_numbers = #tpu.dot_dimension_numbers<[1], [0], [0], [1], [0, 0, 1, 1], [], []>} : vector<32x64xf32>, vector<64x512xf32>, vector<32x512xf32> -> vector<32x512xf32>
    %c0_17 = arith.constant 0 : index
    %c1 = arith.constant 1 : index
    %16 = vector.load %arg6[%c0_17, %c1] : memref<32x3xf32, #tpu.memory_space<vmem>>, vector<32x1xf32>
    %17 = vector.broadcast %16 : vector<32x1xf32> to vector<32x512xf32>
    %18 = arith.addf %15, %17 : vector<32x512xf32>
    %c1_18 = arith.constant 1 : index
    %c0_19 = arith.constant 0 : index
    %c0_20 = arith.constant 0 : index
    %19 = vector.load %arg7[%c1_18, %c0_19, %c0_20] : memref<3x32x512xf32, #tpu.memory_space<vmem>>, vector<1x32x512xf32>
    %20 = vector.shape_cast %19 : vector<1x32x512xf32> to vector<32x512xf32>
    %21 = vector.shape_cast %18 : vector<32x512xf32> to vector<1x32x512xf32>
    tpu.vector_store %arg7[%c1_18, %c0_19, %c0_20], %21 {strides = array<i32>} : memref<3x32x512xf32, #tpu.memory_space<vmem>>, vector<1x32x512xf32>,
    %c0_21 = arith.constant 0 : index
    %c24 = arith.constant 24 : index
    %22 = vector.load %arg4[%c0_21, %c24] : memref<32x56xf32, #tpu.memory_space<vmem>>, vector<32x32xf32>
    %c0_22 = arith.constant 0 : index
    %c0_23 = arith.constant 0 : index
    %23 = vector.load %arg3[%c0_22, %c0_23] : memref<32x16xf32, #tpu.memory_space<vmem>>, vector<32x16xf32>
    %cst_24 = arith.constant dense<0.000000e+00> : vector<32x16xf32>
    %24 = tpu.matmul %22, %23, %cst_24 {dimension_numbers = #tpu.dot_dimension_numbers<[1], [0], [0], [1], [0, 0, 1, 1], [], []>} : vector<32x32xf32>, vector<32x16xf32>, vector<32x16xf32> -> vector<32x16xf32>
    %c320 = arith.constant 320 : index
    %c0_25 = arith.constant 0 : index
    %25 = vector.load %arg5[%c320, %c0_25] : memref<336x512xf32, #tpu.memory_space<vmem>>, vector<16x512xf32>
    %cst_26 = arith.constant dense<0.000000e+00> : vector<32x512xf32>
    %26 = tpu.matmul %24, %25, %cst_26 {dimension_numbers = #tpu.dot_dimension_numbers<[1], [0], [0], [1], [0, 0, 1, 1], [], []>} : vector<32x16xf32>, vector<16x512xf32>, vector<32x512xf32> -> vector<32x512xf32>
    %c0_27 = arith.constant 0 : index
    %c2 = arith.constant 2 : index
    %27 = vector.load %arg6[%c0_27, %c2] : memref<32x3xf32, #tpu.memory_space<vmem>>, vector<32x1xf32>
    %28 = vector.broadcast %27 : vector<32x1xf32> to vector<32x512xf32>
    %29 = arith.addf %26, %28 : vector<32x512xf32>
    %c2_28 = arith.constant 2 : index
    %c0_29 = arith.constant 0 : index
    %c0_30 = arith.constant 0 : index
    %30 = vector.load %arg7[%c2_28, %c0_29, %c0_30] : memref<3x32x512xf32, #tpu.memory_space<vmem>>, vector<1x32x512xf32>
    %31 = vector.shape_cast %30 : vector<1x32x512xf32> to vector<32x512xf32>
    %32 = vector.shape_cast %29 : vector<32x512xf32> to vector<1x32x512xf32>
    tpu.vector_store %arg7[%c2_28, %c0_29, %c0_30], %32 {strides = array<i32>} : memref<3x32x512xf32, #tpu.memory_space<vmem>>, vector<1x32x512xf32>,
    return
  }
  func.func @transform_0(%arg0: i32) -> (i32, i32) {
    %c0_i32 = arith.constant 0 : i32
    %c0_i32_0 = arith.constant 0 : i32
    %c0_i32_1 = arith.constant 0 : i32
    return %c0_i32, %c0_i32_0 : i32, i32
  }
  func.func @transform_1(%arg0: i32) -> (i32, i32) {
    %c0_i32 = arith.constant 0 : i32
    %c0_i32_0 = arith.constant 0 : i32
    %c0_i32_1 = arith.constant 0 : i32
    return %c0_i32, %c0_i32_0 : i32, i32
  }
  func.func @transform_2(%arg0: i32) -> (i32, i32) {
    %c0_i32 = arith.constant 0 : i32
    %c0_i32_0 = arith.constant 0 : i32
    %c0_i32_1 = arith.constant 0 : i32
    return %c0_i32, %c0_i32_0 : i32, i32
  }
  func.func @transform_3(%arg0: i32) -> (i32, i32) {
    %c0_i32 = arith.constant 0 : i32
    %c0_i32_0 = arith.constant 0 : i32
    %c0_i32_1 = arith.constant 0 : i32
    return %c0_i32, %c0_i32_0 : i32, i32
  }
  func.func @transform_4(%arg0: i32) -> (i32, i32) {
    %c0_i32 = arith.constant 0 : i32
    %c0_i32_0 = arith.constant 0 : i32
    return %c0_i32, %arg0 : i32, i32
  }
  func.func @transform_5(%arg0: i32) -> (i32, i32) {
    %c0_i32 = arith.constant 0 : i32
    %c0_i32_0 = arith.constant 0 : i32
    %c0_i32_1 = arith.constant 0 : i32
    return %c0_i32, %c0_i32_0 : i32, i32
  }
  func.func @transform_6(%arg0: i32) -> (i32, i32, i32) {
    %c0_i32 = arith.constant 0 : i32
    %c0_i32_0 = arith.constant 0 : i32
    %c0_i32_1 = arith.constant 0 : i32
    return %c0_i32, %c0_i32_0, %arg0 : i32, i32, i32
  }
}

</mosaic_0001>

<bundles_post_ra>
// kernel: tpu_custom_call.1
= control target key start
LH: loop header
LB: loop body
LE: loop exit
PB: predicated region body
PF: predicated region fallthrough
CT: control target
= control target key end

     0   :  { %s2623_s0 = inlined_call_operand.hbm [shape: f32[8,256], index: 0, kind: input, shape index: {}]   ;;  %s2624_s1 = inlined_call_operand.hbm [shape: f32[16,64], index: 1, kind: input, shape index: {}]   ;;  %s2625_s2 = inlined_call_operand.vmem [shape: f32[32,16], index: 2, kind: input, shape index: {}]   ;;  %s2626_s3 = inlined_call_operand.hbm [shape: f32[32,56], index: 3, kind: input, shape index: {}]   ;;  %s2627_s4 = inlined_call_operand.hbm [shape: f32[336,1024], index: 4, kind: input, shape index: {}]   ;;  %s2628_s5 = inlined_call_operand.vmem [shape: f32[32,3], index: 5, kind: input, shape index: {}]   ;;  %s2629_s6 = inlined_call_operand.hbm [shape: f32[3,32,1024], index: 6, kind: output, shape index: {}]  }
   0x1   :  { %2634 = sst [smem:[#allocation15_spill]] %s2623_s0 }
   0x2   :  { %2635 = sst [smem:[#allocation16_spill]] %s2624_s1 }
   0x3   :  { %11 = vsyncpa [#allocation3], 0 }
   0x4   :  { %12 = vsyncpa [#allocation6], 0 }
   0x5   :  { %13 = vsyncpa [#allocation9], 0 }
   0x6   :  { %15 = vsyncpa [#allocation9 + $0x1], 0 }
   0x7   :  { %16 = vsyncpa [#allocation4], 0 }
   0x8   :  { %18 = vsyncpa [#allocation4 + $0x1], 0  ;;  %s2065_s21 = smov 0   ;;  %s2067_s22 = smov 0  }
   0x9   :  { %s2069_s23 = smov 0   ;;  %s2071_s24 = smov 0  }
   0xa LB: > { %s2086_s25 = sadd.s32 4294967295, %s2009_s24   ;;  %s1615_s26 = sadd.s32 4294967294, %s2009_s24   ;;  %s2009_s24 = sphi %s2071_s24, %s2657_s24   ;;  %s2005_s23 = sphi %s2069_s23, %s2656_s23   ;;  %s2001_s22 = sphi %s2067_s22, %s2655_s22   ;;  %s1997_s21 = sphi %s2065_s21, %s2654_s21  }
   0xb   : > { %s2090_s27 = sadd.s32 1, %s2009_s24   ;;  %s115_s28 = sadd.s32 1, %s2005_s23 }
   0xc   : > { %s112_s29 = ssub.s32 %s2009_s24, %s2090_s27  ;;  %p122_p0 = scmp.ne.s32.totalorder %s2005_s23, %s2001_s22 }
   0xd   : > { %p113_p1 = scmp.eq.s32.totalorder %s112_s29, 0  ;;  %p123_p2 = scmp.eq.s32.totalorder %s2009_s24, 0 }
   0xe   : > { %p128_p3 = scmp.ne.s32.totalorder %s2001_s22, %s1997_s21  ;;  %p2631_p4 = scmp.eq.s32.totalorder %s2086_s25, 0 }
   0xf   : > { %s2102_s30 = scalar_select %p113_p1, %s2005_s23, %s115_s28  }
  0x10   : > { %p2104_p5 = por %p123_p2, %p122_p0  ;;  %p2110_p6 = por %p2631_p4, %p128_p3 }
  0x11   : > { %p173_p7 = scmp.eq.s32.totalorder %s2086_s25, 1  ;;  %p179_p8 = scmp.eq.s32.totalorder %s1615_s26, 1 }
  0x12   : > { %s2637_s8 = scalar_select %p2110_p6, 1, 0 }
  0x13   : > { %p1616_p9 = scmp.ge.s32.totalorder %s2009_s24, 1  ;;  %p186_p10 = scmp.lt.s32.totalorder %s2009_s24, 3 }
  0x14   : > { %p2117_p11 = por %p173_p7, %p122_p0  ;;  %p2121_p12 = por %p179_p8, %p128_p3 }
  0x15   : > { %p2125_p13 = pnand %p1616_p9, %p186_p10  ;;  %s2011_s12 = smov [#allocation5]  }
  0x16   : > { %s2638_s9 = scalar_select %p2117_p11, 1, 0 }
  0x17   : > { %s2639_s10 = scalar_select %p2121_p12, 1, 0 }
  0x18   : > { %s2640_s11 = scalar_select %p2125_p13, 1, 0 }
  0x19   : > { %p1750_p1 = pneg %p2125_p13  ;;  %s209_s13 = sshll.u32 %s2011_s12, 4  ;;  %s210_s13 = int_to_ptr.vmem [resolvable:$true] %s209_s13 }
  0x1a   : > { %p1771_p3 = scmp.lt.s32.totalorder %s2009_s24, 2  ;;  %s2012_s15 = smov [#allocation2]  }
  0x1b   : > { %p2133_p2 = pnand %p1750_p1, %p2631_p4  ;;  %s199_s16 = sshll.u32 %s2012_s15, 4  ;;  %s200_s16 = int_to_ptr.vmem [resolvable:$true] %s199_s16 }
  0x1c   : > { %s1842_s17 = scalar_lea.vmem %s210_s13, 256  ;;  %p1850_p12 = scmp.lt.s32.totalorder %s210_s13, %s210_s13 }
  0x1d   : > { %p1833_p7 = pneg %p2133_p2  ;;  %p1843_p8 = scmp.ne.s32.totalorder %s210_s13, %s1842_s17 }
  0x1e   : > { %p1851_p11 = scmp.lt.s32.totalorder %s1842_s17, %s1842_s17 }
  0x1f   : > { %p1845_p9 = pnand %p1843_p8, %p1833_p7 }
  0x20   : > { %p1852_p1 = por %p1851_p11, %p1850_p12 }
  0x21   : > { %p1846_p10 = pneg %p1845_p9 }
  0x23   : > { %p1853_p4 = pnand %p1852_p1, %p1846_p10 }
  0x25   : > { %1856 = shalt.err (!%p1853_p4)
}
  0x26   : > { %s2013_s18 = smov 128   ;;  %s2014_s19 = smov 8  }
  0x27   : > { %s2642_s1 = sld [smem:[#allocation16_spill]]  ;;  %p2156_p8 = pnand %p1771_p3, %p2104_p5 }
  0x28   : > { %s1868_s29 = scalar_lea.vmem %s200_s16, 256  ;;  %p1876_p9 = scmp.lt.s32.totalorder %s200_s16, %s200_s16 }
  0x29   : > { %p1869_p4 = scmp.ne.s32.totalorder %s200_s16, %s1868_s29  ;;  %p1877_p10 = scmp.lt.s32.totalorder %s1868_s29, %s1868_s29 }
  0x2b   : > { %p1871_p11 = pnand %p1869_p4, %p1833_p7  ;;  %p1878_p1 = por %p1877_p10, %p1876_p9 }
  0x2d   : > { %1756 = dma.hbm_to_vmem [thread:$0]  (!%p2133_p2), %s2642_s1, 256, %s210_s13, [#allocation6], %s2013_s18, %s2013_s18, %s2014_s19  }
  0x2e   : > { %p1872_p12 = pneg %p1871_p11 }
  0x30   : > { %p1879_p0 = pnand %p1878_p1, %p1872_p12 }
  0x32   : > { %1882 = shalt.err (!%p1879_p0)
}
  0x33   : > { %s2644_s0 = sld [smem:[#allocation15_spill]]  ;;  %s2015_s13 = smov [#allocation7]  }
  0x34   : > { %s225_s15 = sshll.u32 %s2015_s13, 4  ;;  %s242_s17 = sand.u32 1, %s2005_s23   ;;  %s226_s15 = int_to_ptr.vmem [resolvable:$true] %s225_s15 }
  0x35   : > { %s1894_s20 = scalar_lea.vmem %s226_s15, 512  ;;  %p1902_p11 = scmp.lt.s32.totalorder %s226_s15, %s226_s15 }
  0x36   : > { %p1895_p5 = scmp.ne.s32.totalorder %s226_s15, %s1894_s20  ;;  %p1903_p0 = scmp.lt.s32.totalorder %s1894_s20, %s1894_s20 }
  0x38   : > { %p1897_p3 = pnand %p1895_p5, %p1833_p7  ;;  %p1904_p12 = por %p1903_p0, %p1902_p11 }
  0x39   : > { %1753 = dma.hbm_to_vmem [thread:$0]  (!%p2133_p2), %s2644_s0, 256, %s200_s16, [#allocation3]  }
  0x3a   : > { %p1898_p4 = pneg %p1897_p3 }
  0x3c   : > { %p1905_p9 = pnand %p1904_p12, %p1898_p4 }
  0x3e   : > { %1908 = shalt.err (!%p1905_p9)
}
  0x3f   : > { %1759 = dma.hbm_to_vmem [thread:$0]  (!%p2133_p2), %s2626_s3, 512, %s226_s15, [#allocation6], %s2013_s18, %s2013_s18, %s2014_s19  }
  0x40   : > { %s1731_s29 = smul.u32 1344, %s242_s17  ;;  %s1691_s7 = sshll.u32 %s2009_s24, 9 }
  0x41   : > { %s2184_s20 = scalar_lea.hbm %s2627_s4, %s1691_s7  ;;  %s2188_s1 = scalar_lea.sflag [#allocation9], %s242_s17 }
  0x42   : > { %s246_s14 = scalar_lea.vmem [#allocation8], %s1731_s29  ;;  %s1909_s16 = scalar_lea.hbm %s2184_s20, 21504 }
  0x43   : > { %s253_s0 = sshll.u32 %s246_s14, 4  ;;  %p1910_p7 = scmp.ne.s32.totalorder %s2184_s20, %s1909_s16  ;;  %s2186_s0 = int_to_ptr.vmem [resolvable:$true] %s253_s0 }
  0x44   : > { %p1911_p2 = pneg %p2156_p8  ;;  %s1914_s15 = scalar_lea.hbm %s2627_s4, 43008 }
  0x45   : > { %p1915_p5 = scmp.lt.s32.totalorder %s2184_s20, %s2627_s4  ;;  %p1916_p3 = scmp.lt.s32.totalorder %s1914_s15, %s1909_s16 }
  0x46   : > { %p1912_p10 = pnand %p1911_p2, %p1910_p7 }
  0x47   : > { %p1917_p4 = por %p1916_p3, %p1915_p5 }
  0x48   : > { %p1913_p1 = pneg %p1912_p10 }
  0x4a   : > { %p1918_p11 = pnand %p1917_p4, %p1913_p1 }
  0x4c   : > { %1921 = shalt.err (!%p1918_p11)
}
  0x4d   : > { %s1922_s17 = scalar_lea.vmem %s2186_s0, 21504  ;;  %s2016_s29 = smov [#allocation8]  }
  0x4e   : > { %p1923_p0 = scmp.ne.s32.totalorder %s2186_s0, %s1922_s17  ;;  %s1927_s12 = sshll.u32 %s2016_s29, 4  ;;  %s1928_s12 = int_to_ptr.vmem [resolvable:$false] %s1927_s12 }
  0x4f   : > { %s1929_s13 = scalar_lea.vmem %s1928_s12, 43008  ;;  %p1930_p7 = scmp.lt.s32.totalorder %s2186_s0, %s1928_s12 }
  0x50   : > { %p1925_p12 = pnand %p1923_p0, %p1911_p2  ;;  %p1931_p10 = scmp.lt.s32.totalorder %s1929_s13, %s1922_s17 }
  0x52   : > { %p1926_p9 = pneg %p1925_p12  ;;  %p1932_p6 = por %p1931_p10, %p1930_p7 }
  0x54   : > { %p1933_p13 = pnand %p1932_p6, %p1926_p9 }
  0x56   : > { %1936 = shalt.err (!%p1933_p13)
}
  0x57   : > { %s2017_s14 = smov 1024   ;;  %s2018_s16 = smov 512  }
  0x58   : > { %s2019_s18 = smov 32   ;;  %p2645_p2 = scmp.ne.s32.totalorder %s2640_s11, 0 }
  0x59   : > { %1763 = dma.hbm_to_vmem [thread:$0]  (!%p2156_p8), %s2184_s20, 21504, %s2186_s0, %s2188_s1, %s2017_s14, %s2018_s16, %s2019_s18  }
  0x5a   : > { %265 = sbr.rel (%p2645_p2) target bundleno = 950 (0x3b6), region = 44  ;;  %p2646_p1 = scmp.eq.s32.totalorder (!%p2645_p2), %s2086_s25, 0 }
  0x5f   : > { %1980 = dma.done.wait (%p2646_p1), [#allocation3], 256   ;;  %p2647_p5 = pmov %p2646_p1 }
  0x60   : > { %p2648_p6 = pmov %p2646_p1 }
  0x61   : > { %1982 = vsyncadd (%p2647_p5), [#allocation3], 4294967040 }
  0x62   : > { %1984 = dma.done.wait (%p2648_p6), [#allocation6], 768   ;;  %p2649_p13 = pmov %p2646_p1 }
  0x63   : > { %s2220_s19 = sand.u32 1, %s2001_s22   ;;  %p2650_p8 = scmp.ne.s32.totalorder %s2637_s8, 0 }
  0x64   : > { %1986 = vsyncadd (%p2649_p13), [#allocation6], 4294966528  ;;  %s1732_s0 = smul.u32 1344, %s2220_s19  ;;  %s280_s1 = scalar_lea.sflag [#allocation9], %s2220_s19 }
  0x66   : > { %s2224_s11 = scalar_lea.vmem [#allocation8], %s1732_s0 }
  0x67   : > { %1988 = dma.done.wait (%p2650_p8), %s280_s1, 21504  }
  0x68   : > { %1990 = vsyncadd (%p2650_p8), %s280_s1, 4294945792  ;;  %v2020_v0 = vmov 0.0   ;;  %v319_v1 = vld [vmem:[#allocation2 + $0x8] sm:$0xff]  ;;  %v318_v2 = vld [vmem:[#allocation2] sm:$0xff]  ;;  %vm320_vm0 = vcmask 64512   ;;  %s2021_s28 = smov 120  }
  0x69   : > { %397 = vmatprep.mubr.f32.mxu0 %v2020_v0  ;;  %v2231_v3 = vld [vmem:[#allocation7] sm:$0xff]  ;;  %363 = vmatprep.subr.mxu0 %v319_v1  ;;  %v2233_v4 = vld [vmem:[#allocation7 + $0x10] sm:$0xff]  ;;  %v483_v5 = vld [vmem:[%s2224_s11 + $0x1e8] sm:$0xff]  ;;  %s2022_s8 = smov 104   ;;  %vm786_vm1 = vcmask 130048   ;;  %s1733_s18 = smul.u32 384, %s2220_s19 }
  0x6a   : > { %778 = vrot.lane.b32.xlu0 %v2231_v3, %s2021_s28  ;;  %364 = vmatpush1.msra.mxu0 %v318_v2  ;;  %v482_v6 = vld [vmem:[%s2224_s11 + $0x1e0] sm:$0xff]  ;;  %v485_v7 = vld [vmem:[%s2224_s11 + $0x1f8] sm:$0xff]  ;;  %v479_v8 = vld [vmem:[%s2224_s11 + $0x1c8] sm:$0xff]  ;;  %vm936_vm2 = vcmask 523264   ;;  %vm1164_vm3 = vcmask 261120   ;;  %s1498_s12 = scalar_lea.sflag [#allocation4], %s2220_s19 }
  0x6b   : > { %782 = vrot.lane.b32.xlu1 %v2233_v4, %s2021_s28  ;;  %1627 = vmatmul.mubr.msk.f32.vlgmr.msra.gmra.mxu0 %vm320_vm0, %v2231_v3  ;;  %v2244_v9 = vld [vmem:[#allocation7 + $0x8] sm:$0xff]  ;;  %v478_v10 = vld [vmem:[%s2224_s11 + $0x1c0] sm:$0xff]  ;;  %v2247_v11 = vld [vmem:[#allocation7 + $0x18] sm:$0xff]  ;;  %s2467_s0 = scalar_lea.vmem [#allocation10], %s1733_s18  ;;  %p2651_p4 = scmp.ne.s32.totalorder %s2638_s9, 0 }
  0x6c   : > { %574 = vmatprep.subr.mxu1 %v483_v5  ;;  %403 = vmatprep.mubr.f32.mxu0 %v2020_v0  ;;  %v484_v12 = vld [vmem:[%s2224_s11 + $0x1f0] sm:$0xff]  ;;  %v481_v13 = vld [vmem:[%s2224_s11 + $0x1d8] sm:$0xff]  ;;  %v475_v14 = vld [vmem:[%s2224_s11 + $0x1a8] sm:$0xff]  ;;  %s1511_s7 = sshll.u32 %s2467_s0, 4  ;;  %s2026_s14 = smov [#allocation10]   ;;  %s2576_s7 = int_to_ptr.vmem [resolvable:$true] %s1511_s7 }
  0x6d   : > { %575 = vmatpush1.msra.mxu1 %v482_v6  ;;  %663 = vmatprep.subr.mxu0 %v485_v7  ;;  %v480_v15 = vld [vmem:[%s2224_s11 + $0x1d0] sm:$0xff]  ;;  %v474_v16 = vld [vmem:[%s2224_s11 + $0x1a0] sm:$0xff]  ;;  %v477_v17 = vld [vmem:[%s2224_s11 + $0x1b8] sm:$0xff]  ;;  %s1937_s13 = scalar_lea.vmem %s2576_s7, 6144  ;;  %s1941_s16 = sshll.u32 %s2026_s14, 4  ;;  %s1942_s16 = int_to_ptr.vmem [resolvable:$false] %s1941_s16 }
  0x6e   : > { %780 = vrot.lane.b32.xlu0 %v2244_v9, %s2021_s28  ;;  %576 = vmatprep.subr.mxu1 %v479_v8  ;;  %v471_v18 = vld [vmem:[%s2224_s11 + $0x188] sm:$0xff]  ;;  %v476_v19 = vld [vmem:[%s2224_s11 + $0x1b0] sm:$0xff]  ;;  %v470_v20 = vld [vmem:[%s2224_s11 + $0x180] sm:$0xff]  ;;  %p1938_p3 = scmp.ne.s32.totalorder %s2576_s7, %s1937_s13  ;;  %s1943_s18 = scalar_lea.vmem %s1942_s16, 12288 }
  0x6f   : > { %784 = vrot.lane.b32.xlu1 %v2247_v11, %s2021_s28  ;;  %1628 = vmatmul.mubr.msk.f32.gmra.mxu0 %vm320_vm0, %v2244_v9  ;;  %v473_v21 = vld [vmem:[%s2224_s11 + $0x198] sm:$0xff]  ;;  %v467_v22 = vld [vmem:[%s2224_s11 + $0x168] sm:$0xff]  ;;  %v466_v23 = vld [vmem:[%s2224_s11 + $0x160] sm:$0xff]  ;;  %p1944_p12 = scmp.lt.s32.totalorder %s2576_s7, %s1942_s16  ;;  %p1945_p9 = scmp.lt.s32.totalorder %s1943_s18, %s1937_s13 }
  0x70   : > { %577 = vmatpush1.msra.mxu1 %v478_v10  ;;  %409 = vmatprep.mubr.f32.mxu0 %v2020_v0  ;;  %v472_v24 = vld [vmem:[%s2224_s11 + $0x190] sm:$0xff]  ;;  %v463_v25 = vld [vmem:[%s2224_s11 + $0x148] sm:$0xff]  ;;  %v469_v26 = vld [vmem:[%s2224_s11 + $0x178] sm:$0xff]  ;;  %p1939_p11 = pnand %p1938_p3, %p2651_p4 }
  0x71   : > { %664 = vmatpush1.msra.mxu0 %v484_v12  ;;  %578 = vmatprep.subr.mxu1 %v475_v14  ;;  %v462_v27 = vld [vmem:[%s2224_s11 + $0x140] sm:$0xff]  ;;  %v468_v28 = vld [vmem:[%s2224_s11 + $0x170] sm:$0xff]  ;;  %v459_v29 = vld [vmem:[%s2224_s11 + $0x128] sm:$0xff]  ;;  %p1946_p7 = por %p1945_p9, %p1944_p12 }
  0x72   : > { %665 = vmatprep.subr.mxu0 %v481_v13  ;;  %579 = vmatpush1.msra.mxu1 %v474_v16  ;;  %v465_v30 = vld [vmem:[%s2224_s11 + $0x158] sm:$0xff]  ;;  %v458_v31 = vld [vmem:[%s2224_s11 + $0x120] sm:$0xff]  ;;  %v464_v32 = vld [vmem:[%s2224_s11 + $0x150] sm:$0xff]  ;;  %p1940_p0 = pneg %p1939_p11 }
  0x73   : > { %666 = vmatpush1.msra.mxu0 %v480_v15  ;;  %580 = vmatprep.subr.mxu1 %v471_v18  ;;  %v455_v33 = vld [vmem:[%s2224_s11 + $0x108] sm:$0xff]  ;;  %v461_v34 = vld [vmem:[%s2224_s11 + $0x138] sm:$0xff]  ;;  %v454_v35 = vld [vmem:[%s2224_s11 + $0x100] sm:$0xff] }
  0x74   : > { %1629 = vmatmul.mubr.msk.f32.gmra.mxu0 %vm320_vm0, %v2233_v4  ;;  %667 = vmatprep.subr.mxu0 %v477_v17  ;;  %v460_v36 = vld [vmem:[%s2224_s11 + $0x130] sm:$0xff]  ;;  %v451_v37 = vld [vmem:[%s2224_s11 + $0xe8] sm:$0xff]  ;;  %v457_v38 = vld [vmem:[%s2224_s11 + $0x118] sm:$0xff]  ;;  %p1947_p10 = pnand %p1946_p7, %p1940_p0 }
  0x75   : > { %415 = vmatprep.mubr.f32.mxu0 %v2020_v0  ;;  %668 = vmatpush1.msra.mxu0 %v476_v19  ;;  %v450_v39 = vld [vmem:[%s2224_s11 + $0xe0] sm:$0xff]  ;;  %v456_v40 = vld [vmem:[%s2224_s11 + $0x110] sm:$0xff]  ;;  %v447_v41 = vld [vmem:[%s2224_s11 + $0xc8] sm:$0xff] }
  0x76   : > { %581 = vmatpush1.msra.mxu1 %v470_v20  ;;  %669 = vmatprep.subr.mxu0 %v473_v21  ;;  %v453_v42 = vld [vmem:[%s2224_s11 + $0xf8] sm:$0xff]  ;;  %v446_v43 = vld [vmem:[%s2224_s11 + $0xc0] sm:$0xff]  ;;  %v452_v44 = vld [vmem:[%s2224_s11 + $0xf0] sm:$0xff] }
  0x77   : > { %582 = vmatprep.subr.mxu1 %v467_v22  ;;  %670 = vmatpush1.msra.mxu0 %v472_v24  ;;  %v443_v45 = vld [vmem:[%s2224_s11 + $0xa8] sm:$0xff]  ;;  %v449_v46 = vld [vmem:[%s2224_s11 + $0xd8] sm:$0xff]  ;;  %v442_v47 = vld [vmem:[%s2224_s11 + $0xa0] sm:$0xff] }
  0x78   : > { %1630 = vmatmul.mubr.msk.f32.gmra.mxu0 %vm320_vm0, %v2247_v11  ;;  %583 = vmatpush1.msra.mxu1 %v466_v23  ;;  %v448_v48 = vld [vmem:[%s2224_s11 + $0xd0] sm:$0xff]  ;;  %v439_v49 = vld [vmem:[%s2224_s11 + $0x88] sm:$0xff]  ;;  %v445_v50 = vld [vmem:[%s2224_s11 + $0xb8] sm:$0xff] }
  0x79   : > { %584 = vmatprep.subr.mxu1 %v463_v25  ;;  %671 = vmatprep.subr.mxu0 %v469_v26  ;;  %v438_v51 = vld [vmem:[%s2224_s11 + $0x80] sm:$0xff]  ;;  %v444_v52 = vld [vmem:[%s2224_s11 + $0xb0] sm:$0xff]  ;;  %v435_v53 = vld [vmem:[%s2224_s11 + $0x68] sm:$0xff] }
  0x7a   : > { %585 = vmatpush1.msra.mxu1 %v462_v27  ;;  %672 = vmatpush1.msra.mxu0 %v468_v28  ;;  %v441_v54 = vld [vmem:[%s2224_s11 + $0x98] sm:$0xff]  ;;  %v434_v55 = vld [vmem:[%s2224_s11 + $0x60] sm:$0xff]  ;;  %v440_v56 = vld [vmem:[%s2224_s11 + $0x90] sm:$0xff] }
  0x7b   : > { %586 = vmatprep.subr.mxu1 %v459_v29  ;;  %673 = vmatprep.subr.mxu0 %v465_v30  ;;  %v431_v57 = vld [vmem:[%s2224_s11 + $0x48] sm:$0xff]  ;;  %v437_v58 = vld [vmem:[%s2224_s11 + $0x78] sm:$0xff]  ;;  %v430_v59 = vld [vmem:[%s2224_s11 + $0x40] sm:$0xff] }
  0x7c   : > { %587 = vmatpush1.msra.mxu1 %v458_v31  ;;  %674 = vmatpush1.msra.mxu0 %v464_v32  ;;  %v436_v60 = vld [vmem:[%s2224_s11 + $0x70] sm:$0xff]  ;;  %v427_v61 = vld [vmem:[%s2224_s11 + $0x28] sm:$0xff]  ;;  %v433_v62 = vld [vmem:[%s2224_s11 + $0x58] sm:$0xff] }
  0x7d   : > { %588 = vmatprep.subr.mxu1 %v455_v33  ;;  %675 = vmatprep.subr.mxu0 %v461_v34  ;;  %v426_v63 = vld [vmem:[%s2224_s11 + $0x20] sm:$0xff]  ;;  %v432_v1 = vld [vmem:[%s2224_s11 + $0x50] sm:$0xff]  ;;  %v423_v2 = vld [vmem:[%s2224_s11 + $0x8] sm:$0xff] }
  0x7e   : > { %589 = vmatpush1.msra.mxu1 %v454_v35  ;;  %676 = vmatpush1.msra.mxu0 %v460_v36  ;;  %v429_v5 = vld [vmem:[%s2224_s11 + $0x38] sm:$0xff]  ;;  %v422_v6 = vld [vmem:[%s2224_s11] sm:$0xff]  ;;  %v428_v7 = vld [vmem:[%s2224_s11 + $0x30] sm:$0xff] }
  0x7f   : > { %590 = vmatprep.subr.mxu1 %v451_v37  ;;  %677 = vmatprep.subr.mxu0 %v457_v38  ;;  %v547_v8 = vld [vmem:[%s2224_s11 + $0x3e8] sm:$0xff]  ;;  %v425_v10 = vld [vmem:[%s2224_s11 + $0x18] sm:$0xff]  ;;  %v546_v12 = vld [vmem:[%s2224_s11 + $0x3e0] sm:$0xff] }
  0x80   : > { %591 = vmatpush1.msra.mxu1 %v450_v39  ;;  %678 = vmatpush1.msra.mxu0 %v456_v40  ;;  %v424_v13 = vld [vmem:[%s2224_s11 + $0x10] sm:$0xff]  ;;  %v543_v14 = vld [vmem:[%s2224_s11 + $0x3c8] sm:$0xff]  ;;  %v549_v15 = vld [vmem:[%s2224_s11 + $0x3f8] sm:$0xff] }
  0x81   : > { %592 = vmatprep.subr.mxu1 %v447_v41  ;;  %679 = vmatprep.subr.mxu0 %v453_v42  ;;  %v542_v16 = vld [vmem:[%s2224_s11 + $0x3c0] sm:$0xff]  ;;  %v548_v17 = vld [vmem:[%s2224_s11 + $0x3f0] sm:$0xff]  ;;  %v539_v18 = vld [vmem:[%s2224_s11 + $0x3a8] sm:$0xff] }
  0x82   : > { %593 = vmatpush1.msra.mxu1 %v446_v43  ;;  %680 = vmatpush1.msra.mxu0 %v452_v44  ;;  %v545_v19 = vld [vmem:[%s2224_s11 + $0x3d8] sm:$0xff]  ;;  %v538_v20 = vld [vmem:[%s2224_s11 + $0x3a0] sm:$0xff]  ;;  %v544_v21 = vld [vmem:[%s2224_s11 + $0x3d0] sm:$0xff] }
  0x83   : > { %594 = vmatprep.subr.mxu1 %v443_v45  ;;  %681 = vmatprep.subr.mxu0 %v449_v46  ;;  %v535_v22 = vld [vmem:[%s2224_s11 + $0x388] sm:$0xff]  ;;  %v541_v23 = vld [vmem:[%s2224_s11 + $0x3b8] sm:$0xff]  ;;  %v534_v24 = vld [vmem:[%s2224_s11 + $0x380] sm:$0xff] }
  0x84   : > { %595 = vmatpush1.msra.mxu1 %v442_v47  ;;  %682 = vmatpush1.msra.mxu0 %v448_v48  ;;  %v540_v25 = vld [vmem:[%s2224_s11 + $0x3b0] sm:$0xff]  ;;  %v531_v26 = vld [vmem:[%s2224_s11 + $0x368] sm:$0xff]  ;;  %v537_v27 = vld [vmem:[%s2224_s11 + $0x398] sm:$0xff] }
  0x85   : > { %596 = vmatprep.subr.mxu1 %v439_v49  ;;  %683 = vmatprep.subr.mxu0 %v445_v50  ;;  %v530_v28 = vld [vmem:[%s2224_s11 + $0x360] sm:$0xff]  ;;  %v536_v29 = vld [vmem:[%s2224_s11 + $0x390] sm:$0xff]  ;;  %v527_v30 = vld [vmem:[%s2224_s11 + $0x348] sm:$0xff] }
  0x86   : > { %597 = vmatpush1.msra.mxu1 %v438_v51  ;;  %684 = vmatpush1.msra.mxu0 %v444_v52  ;;  %v533_v31 = vld [vmem:[%s2224_s11 + $0x378] sm:$0xff]  ;;  %v526_v32 = vld [vmem:[%s2224_s11 + $0x340] sm:$0xff]  ;;  %v532_v33 = vld [vmem:[%s2224_s11 + $0x370] sm:$0xff] }
  0x87   : > { %598 = vmatprep.subr.mxu1 %v435_v53  ;;  %685 = vmatprep.subr.mxu0 %v441_v54  ;;  %v523_v34 = vld [vmem:[%s2224_s11 + $0x328] sm:$0xff]  ;;  %v529_v35 = vld [vmem:[%s2224_s11 + $0x358] sm:$0xff]  ;;  %v522_v36 = vld [vmem:[%s2224_s11 + $0x320] sm:$0xff] }
  0x88   : > { %599 = vmatpush1.msra.mxu1 %v434_v55  ;;  %686 = vmatpush1.msra.mxu0 %v440_v56  ;;  %v528_v37 = vld [vmem:[%s2224_s11 + $0x350] sm:$0xff]  ;;  %v519_v38 = vld [vmem:[%s2224_s11 + $0x308] sm:$0xff]  ;;  %v525_v39 = vld [vmem:[%s2224_s11 + $0x338] sm:$0xff] }
  0x89   : > { %600 = vmatprep.subr.mxu1 %v431_v57  ;;  %687 = vmatprep.subr.mxu0 %v437_v58  ;;  %v518_v40 = vld [vmem:[%s2224_s11 + $0x300] sm:$0xff]  ;;  %v524_v41 = vld [vmem:[%s2224_s11 + $0x330] sm:$0xff]  ;;  %v515_v42 = vld [vmem:[%s2224_s11 + $0x2e8] sm:$0xff] }
  0x8a   : > { %601 = vmatpush1.msra.mxu1 %v430_v59  ;;  %688 = vmatpush1.msra.mxu0 %v436_v60  ;;  %v521_v43 = vld [vmem:[%s2224_s11 + $0x318] sm:$0xff]  ;;  %v514_v44 = vld [vmem:[%s2224_s11 + $0x2e0] sm:$0xff]  ;;  %v520_v45 = vld [vmem:[%s2224_s11 + $0x310] sm:$0xff] }
  0x8b   : > { %602 = vmatprep.subr.mxu1 %v427_v61  ;;  %689 = vmatprep.subr.mxu0 %v433_v62  ;;  %v511_v46 = vld [vmem:[%s2224_s11 + $0x2c8] sm:$0xff]  ;;  %v517_v47 = vld [vmem:[%s2224_s11 + $0x2f8] sm:$0xff]  ;;  %v510_v48 = vld [vmem:[%s2224_s11 + $0x2c0] sm:$0xff] }
  0x8c   : > { %603 = vmatpush1.msra.mxu1 %v426_v63  ;;  %690 = vmatpush1.msra.mxu0 %v432_v1  ;;  %v516_v49 = vld [vmem:[%s2224_s11 + $0x2f0] sm:$0xff]  ;;  %v507_v50 = vld [vmem:[%s2224_s11 + $0x2a8] sm:$0xff]  ;;  %v513_v51 = vld [vmem:[%s2224_s11 + $0x2d8] sm:$0xff] }
  0x8d   : > { %604 = vmatprep.subr.mxu1 %v423_v2  ;;  %691 = vmatprep.subr.mxu0 %v429_v5  ;;  %v506_v52 = vld [vmem:[%s2224_s11 + $0x2a0] sm:$0xff]  ;;  %v512_v53 = vld [vmem:[%s2224_s11 + $0x2d0] sm:$0xff]  ;;  %v503_v54 = vld [vmem:[%s2224_s11 + $0x288] sm:$0xff] }
  0x8e   : > { %605 = vmatpush1.msra.mxu1 %v422_v6  ;;  %692 = vmatpush1.msra.mxu0 %v428_v7  ;;  %v509_v55 = vld [vmem:[%s2224_s11 + $0x2b8] sm:$0xff]  ;;  %v502_v56 = vld [vmem:[%s2224_s11 + $0x280] sm:$0xff]  ;;  %v508_v57 = vld [vmem:[%s2224_s11 + $0x2b0] sm:$0xff] }
  0x8f   : > { %606 = vmatprep.subr.mxu1 %v547_v8  ;;  %693 = vmatprep.subr.mxu0 %v425_v10  ;;  %v499_v58 = vld [vmem:[%s2224_s11 + $0x268] sm:$0xff]  ;;  %v505_v59 = vld [vmem:[%s2224_s11 + $0x298] sm:$0xff]  ;;  %v498_v60 = vld [vmem:[%s2224_s11 + $0x260] sm:$0xff] }
  0x90   : > { %607 = vmatpush2.msra.mxu1 %v546_v12  ;;  %694 = vmatpush1.msra.mxu0 %v424_v13  ;;  %v504_v61 = vld [vmem:[%s2224_s11 + $0x290] sm:$0xff]  ;;  %v495_v62 = vld [vmem:[%s2224_s11 + $0x248] sm:$0xff]  ;;  %v501_v63 = vld [vmem:[%s2224_s11 + $0x278] sm:$0xff] }
  0x91   : > { %608 = vmatprep.subr.mxu1 %v543_v14  ;;  %695 = vmatprep.subr.mxu0 %v549_v15  ;;  %v494_v1 = vld [vmem:[%s2224_s11 + $0x240] sm:$0xff]  ;;  %v500_v2 = vld [vmem:[%s2224_s11 + $0x270] sm:$0xff]  ;;  %v491_v5 = vld [vmem:[%s2224_s11 + $0x228] sm:$0xff] }
  0x92   : > { %609 = vmatpush2.msra.mxu1 %v542_v16  ;;  %696 = vmatpush2.msra.mxu0 %v548_v17  ;;  %v497_v6 = vld [vmem:[%s2224_s11 + $0x258] sm:$0xff]  ;;  %v496_v7 = vld [vmem:[%s2224_s11 + $0x250] sm:$0xff]  ;;  %v490_v10 = vld [vmem:[%s2224_s11 + $0x220] sm:$0xff] }
  0x93   : > { %610 = vmatprep.subr.mxu1 %v539_v18  ;;  %697 = vmatprep.subr.mxu0 %v545_v19  ;;  %v493_v8 = vld [vmem:[%s2224_s11 + $0x238] sm:$0xff]  ;;  %v487_v12 = vld [vmem:[%s2224_s11 + $0x208] sm:$0xff]  ;;  %v492_v13 = vld [vmem:[%s2224_s11 + $0x230] sm:$0xff]  ;;  %v2023_v18 = vmov 0  }
  0x94   : > { %611 = vmatpush2.msra.mxu1 %v538_v20  ;;  %698 = vmatpush2.msra.mxu0 %v544_v21  ;;  %v489_v14 = vld [vmem:[%s2224_s11 + $0x218] sm:$0xff]  ;;  %v486_v15 = vld [vmem:[%s2224_s11 + $0x200] sm:$0xff]  ;;  %v488_v16 = vld [vmem:[%s2224_s11 + $0x210] sm:$0xff] }
  0x95   : > { %612 = vmatprep.subr.mxu1 %v535_v22  ;;  %699 = vmatprep.subr.mxu0 %v541_v23  ;;  %v773_v17 = vld [vmem:[#allocation5 + $0x8] sm:$0xff]  ;;  %v2389_v19 = vld [vmem:[%s2628_s5] sm:$0xff]  ;;  %v2394_v20 = vld [vmem:[%s2628_s5 + $0x8] sm:$0xff] }
  0x96   : > { %613 = vmatpush2.msra.mxu1 %v534_v24  ;;  %700 = vmatpush2.msra.mxu0 %v540_v25  ;;  %v772_v21 = vld [vmem:[#allocation5] sm:$0xff] }
  0x97   : > { %614 = vmatprep.subr.mxu1 %v531_v26  ;;  %701 = vmatprep.subr.mxu0 %v537_v27 }
  0x98   : > { %615 = vmatpush2.msra.mxu1 %v530_v28  ;;  %702 = vmatpush2.msra.mxu0 %v536_v29 }
  0x99   : > { %616 = vmatprep.subr.mxu1 %v527_v30  ;;  %703 = vmatprep.subr.mxu0 %v533_v31 }
  0x9a   : > { %617 = vmatpush2.msra.mxu1 %v526_v32  ;;  %704 = vmatpush2.msra.mxu0 %v532_v33  ;;  %v909_v32 = vld [vmem:[%s2224_s11 + $0x4e8] sm:$0xff]  ;;  %v911_v33 = vld [vmem:[%s2224_s11 + $0x4f8] sm:$0xff] }
  0x9b   : > { %618 = vmatprep.subr.mxu1 %v523_v34  ;;  %705 = vmatprep.subr.mxu0 %v529_v35  ;;  %v908_v34 = vld [vmem:[%s2224_s11 + $0x4e0] sm:$0xff]  ;;  %v910_v35 = vld [vmem:[%s2224_s11 + $0x4f0] sm:$0xff] }
  0x9c   : > { %619 = vmatpush2.msra.mxu1 %v522_v36  ;;  %706 = vmatpush2.msra.mxu0 %v528_v37  ;;  %v905_v36 = vld [vmem:[%s2224_s11 + $0x4c8] sm:$0xff]  ;;  %v907_v37 = vld [vmem:[%s2224_s11 + $0x4d8] sm:$0xff] }
  0x9d   : > { %620 = vmatprep.subr.mxu1 %v519_v38  ;;  %707 = vmatprep.subr.mxu0 %v525_v39  ;;  %v904_v38 = vld [vmem:[%s2224_s11 + $0x4c0] sm:$0xff]  ;;  %v906_v39 = vld [vmem:[%s2224_s11 + $0x4d0] sm:$0xff] }
  0x9e   : > { %621 = vmatpush2.msra.mxu1 %v518_v40  ;;  %708 = vmatpush2.msra.mxu0 %v524_v41  ;;  %v901_v40 = vld [vmem:[%s2224_s11 + $0x4a8] sm:$0xff]  ;;  %v903_v41 = vld [vmem:[%s2224_s11 + $0x4b8] sm:$0xff] }
  0x9f   : > { %622 = vmatprep.subr.mxu1 %v515_v42  ;;  %709 = vmatprep.subr.mxu0 %v521_v43  ;;  %v900_v42 = vld [vmem:[%s2224_s11 + $0x4a0] sm:$0xff]  ;;  %v902_v43 = vld [vmem:[%s2224_s11 + $0x4b0] sm:$0xff] }
  0xa0   : > { %623 = vmatpush2.msra.mxu1 %v514_v44  ;;  %710 = vmatpush2.msra.mxu0 %v520_v45  ;;  %v897_v44 = vld [vmem:[%s2224_s11 + $0x488] sm:$0xff]  ;;  %v899_v45 = vld [vmem:[%s2224_s11 + $0x498] sm:$0xff] }
  0xa1   : > { %624 = vmatprep.subr.mxu1 %v511_v46  ;;  %711 = vmatprep.subr.mxu0 %v517_v47  ;;  %v896_v46 = vld [vmem:[%s2224_s11 + $0x480] sm:$0xff]  ;;  %v898_v47 = vld [vmem:[%s2224_s11 + $0x490] sm:$0xff] }
  0xa2   : > { %625 = vmatpush2.msra.mxu1 %v510_v48  ;;  %712 = vmatpush2.msra.mxu0 %v516_v49  ;;  %v893_v48 = vld [vmem:[%s2224_s11 + $0x468] sm:$0xff]  ;;  %v895_v49 = vld [vmem:[%s2224_s11 + $0x478] sm:$0xff] }
  0xa3   : > { %626 = vmatprep.subr.mxu1 %v507_v50  ;;  %713 = vmatprep.subr.mxu0 %v513_v51  ;;  %v892_v50 = vld [vmem:[%s2224_s11 + $0x460] sm:$0xff]  ;;  %v894_v51 = vld [vmem:[%s2224_s11 + $0x470] sm:$0xff] }
  0xa4   : > { %627 = vmatpush2.msra.mxu1 %v506_v52  ;;  %714 = vmatpush2.msra.mxu0 %v512_v53  ;;  %v889_v52 = vld [vmem:[%s2224_s11 + $0x448] sm:$0xff]  ;;  %v891_v53 = vld [vmem:[%s2224_s11 + $0x458] sm:$0xff] }
  0xa5   : > { %628 = vmatprep.subr.mxu1 %v503_v54  ;;  %715 = vmatprep.subr.mxu0 %v509_v55  ;;  %v888_v54 = vld [vmem:[%s2224_s11 + $0x440] sm:$0xff]  ;;  %v890_v55 = vld [vmem:[%s2224_s11 + $0x450] sm:$0xff] }
  0xa6   : > { %629 = vmatpush2.msra.mxu1 %v502_v56  ;;  %716 = vmatpush2.msra.mxu0 %v508_v57  ;;  %v885_v56 = vld [vmem:[%s2224_s11 + $0x428] sm:$0xff]  ;;  %v887_v57 = vld [vmem:[%s2224_s11 + $0x438] sm:$0xff] }
  0xa7   : > { %630 = vmatprep.subr.mxu1 %v499_v58  ;;  %717 = vmatprep.subr.mxu0 %v505_v59  ;;  %v884_v58 = vld [vmem:[%s2224_s11 + $0x420] sm:$0xff]  ;;  %v886_v59 = vld [vmem:[%s2224_s11 + $0x430] sm:$0xff] }
  0xa8   : > { %631 = vmatpush2.msra.mxu1 %v498_v60  ;;  %718 = vmatpush2.msra.mxu0 %v504_v61  ;;  %v881_v60 = vld [vmem:[%s2224_s11 + $0x408] sm:$0xff]  ;;  %v883_v61 = vld [vmem:[%s2224_s11 + $0x418] sm:$0xff] }
  0xa9   : > { %632 = vmatprep.subr.mxu1 %v495_v62  ;;  %719 = vmatprep.subr.mxu0 %v501_v63  ;;  %v880_v62 = vld [vmem:[%s2224_s11 + $0x400] sm:$0xff]  ;;  %v882_v63 = vld [vmem:[%s2224_s11 + $0x410] sm:$0xff] }
  0xaa   : > { %633 = vmatpush2.msra.mxu1 %v494_v1  ;;  %720 = vmatpush2.msra.mxu0 %v500_v2  ;;  %v2451_v1 = vld [vmem:[%s2625_s2 + $0x18] sm:$0xff]  ;;  %v2024_v2 = vmov 1  }
  0xab   : > { %634 = vmatprep.subr.mxu1 %v491_v5  ;;  %721 = vmatprep.subr.mxu0 %v497_v6 }
  0xac   : > { %722 = vmatpush2.msra.mxu0 %v496_v7  ;;  %635 = vmatpush2.msra.mxu1 %v490_v10 }
  0xad   : > { %723 = vmatprep.subr.mxu0 %v493_v8  ;;  %636 = vmatprep.subr.mxu1 %v487_v12 }
  0xae   : > { %724 = vmatpush2.msra.mxu0 %v492_v13  ;;  %637 = vmatpush2.msra.mxu1 %v486_v15 }
  0xaf   : > { %725 = vmatprep.subr.mxu0 %v489_v14  ;;  %1707 = vmatprep.subr.mxu1 %v773_v17 }
  0xb0   : > { %726 = vmatpush2.msra.mxu0 %v488_v16  ;;  %1156 = vrot.lane.b32.xlu0 %v2231_v3, %s2022_s8  ;;  %v2401_v3 = vld [vmem:[%s2628_s5 + $0x10] sm:$0xff] }
  0xb1   : > { %1158 = vrot.lane.b32.xlu1 %v2244_v9, %s2022_s8  ;;  %1825 = vset.pattern.permute.xlu0 %v2023_v18 }
  0xb2   : > { %1826 = vset.pattern.permute.xlu1 %v2023_v18  ;;  %965 = vmatprep.subr.mxu0 %v909_v32 }
  0xb4   : > { %1160 = vrot.lane.b32.xlu0 %v2233_v4, %s2022_s8  ;;  %v2406_v4 = vld [vmem:[%s2628_s5 + $0x18] sm:$0xff] }
  0xb5   : > { %1162 = vrot.lane.b32.xlu1 %v2247_v11, %s2022_s8 }
  0xb8   : > { %556 = vperm.xlu0 %1825, %v2389_v19  }
  0xb9   : > { %561 = vperm.xlu1 %1826, %v2394_v20  }
  0xbc   : > { %571 = vperm.xlu0 %1825, %v2406_v4  }
  0xbd   : > { %566 = vperm.xlu1 %1826, %v2401_v3  }
  0xc0   : > { %1828 = vset.pattern.permute.xlu0 %v2024_v2 }
  0xc1   : > { %1827 = vset.pattern.permute.xlu1 %v2024_v2  ;;  %923 = vperm.xlu0 %1828, %v2394_v20  }
  0xc2   : > { %918 = vperm.xlu1 %1827, %v2389_v19  }
  0xc6   : > { %928 = vperm.xlu1 %1827, %v2401_v3  }
  0xca   : > { %933 = vperm.xlu1 %1827, %v2406_v4  }
  0xdc   : > { %v779_v26 = vpop.permute.xlu0 %778 }
  0xdd   : > { %v783_v29 = vpop.permute.xlu1 %782 }
  0xe0   : > { %v781_v30 = vpop.permute.xlu0 %780 }
  0xe1   : > { %v785_v31 = vpop.permute.xlu1 %784 }
 0x122   : > { %v2458_v5 = vpop.permute.xlu0 %1156 }
 0x123   : > { %v2460_v6 = vpop.permute.xlu1 %1158 }
 0x126   : > { %v2462_v7 = vpop.permute.xlu0 %1160 }
 0x127   : > { %v2464_v8 = vpop.permute.xlu1 %1162 }
 0x12b   : > { %v399_v9 = vpop.f32.mrf.mxu0 }
 0x12d   : > { %v401_v11 = vpop.f32.mrf.mxu0 }
 0x12e   : > { %638 = vmatprep.mubr.f32.mxu1 %v401_v11  ;;  %727 = vmatprep.mubr.f32.mxu0 %v401_v11 }
 0x12f   : > { %v405_v22 = vpop.f32.mrf.mxu0  ;;  %639 = vmatmul.mubr.f32.vlgmr.msra.gmra.mxu1 %v399_v9  ;;  %728 = vmatmul.mubr.f32.vlgmr.msra.gmra.mxu0 %v399_v9 }
 0x130   : > { %1708 = vmatpush3.msra.mxu1 %v773_v17  ;;  %966 = vmatpush1.msra.mxu0 %v908_v34 }
 0x131   : > { %v407_v23 = vpop.f32.mrf.mxu0  ;;  %1709 = vmatprep.subr.mxu1 %v772_v21  ;;  %967 = vmatprep.subr.mxu0 %v905_v36 }
 0x132   : > { %644 = vmatprep.mubr.f32.mxu1 %v407_v23  ;;  %733 = vmatprep.mubr.f32.mxu0 %v407_v23 }
 0x133   : > { %645 = vmatmul.mubr.f32.gmra.mxu1 %v405_v22  ;;  %734 = vmatmul.mubr.f32.gmra.mxu0 %v405_v22  ;;  %v557_v10 = vpop.permute.xlu0 %556 }
 0x134   : > { %v411_v24 = vpop.f32.mrf.mxu0  ;;  %1710 = vmatpush3.msra.mxu1 %v772_v21  ;;  %968 = vmatpush1.msra.mxu0 %v904_v38  ;;  %v562_v12 = vpop.permute.xlu1 %561 }
 0x135   : > { %1054 = vmatprep.subr.mxu1 %v911_v33  ;;  %969 = vmatprep.subr.mxu0 %v901_v40 }
 0x136   : > { %v413_v25 = vpop.f32.mrf.mxu0  ;;  %970 = vmatpush1.msra.mxu0 %v900_v42 }
 0x137   : > { %650 = vmatprep.mubr.f32.mxu1 %v413_v25  ;;  %739 = vmatprep.mubr.f32.mxu0 %v413_v25  ;;  %v572_v34 = vpop.permute.xlu0 %571 }
 0x138   : > { %v417_v27 = vpop.f32.mrf.mxu0  ;;  %651 = vmatmul.mubr.f32.gmra.mxu1 %v411_v24  ;;  %740 = vmatmul.mubr.f32.gmra.mxu0 %v411_v24  ;;  %v567_v25 = vpop.permute.xlu1 %566 }
 0x139   : > { %971 = vmatprep.subr.mxu0 %v897_v44 }
 0x13a   : > { %v419_v28 = vpop.f32.mrf.mxu0  ;;  %972 = vmatpush1.msra.mxu0 %v896_v46 }
 0x13b   : > { %656 = vmatprep.mubr.f32.mxu1 %v419_v28  ;;  %745 = vmatprep.mubr.f32.mxu0 %v419_v28 }
 0x13c   : > { %657 = vmatmul.mubr.f32.gmra.mxu1 %v417_v27  ;;  %746 = vmatmul.mubr.f32.gmra.mxu0 %v417_v27 }
 0x13d   : > { %1711 = vmatprep.mubr.msk.f32.mxu1 %vm786_vm1, %v779_v26  ;;  %1013 = vmatprep.mubr.f32.mxu0 %v2020_v0 }
 0x13e   : > { %973 = vmatprep.subr.mxu0 %v893_v48 }
 0x13f   : > { %974 = vmatpush1.msra.mxu0 %v892_v50 }
 0x140   : > { %1712 = vmatmul.mubr.msk.f32.vlgmr.msra.gmra.mxu1 %vm786_vm1, %v781_v30  ;;  %975 = vmatprep.subr.mxu0 %v889_v52 }
 0x141   : > { %1714 = vmatprep.mubr.msk.f32.mxu1 %vm786_vm1, %v783_v29  ;;  %1055 = vmatpush1.msra.mxu1 %v910_v35 }
 0x142   : > { %1056 = vmatprep.subr.mxu1 %v907_v37  ;;  %976 = vmatpush1.msra.mxu0 %v888_v54  ;;  %v1265_v54 = vld [vmem:[%s2224_s11 + $0x538] sm:$0xff] }
 0x143   : > { %1057 = vmatpush1.msra.mxu1 %v906_v39  ;;  %977 = vmatprep.subr.mxu0 %v885_v56  ;;  %v1263_v56 = vld [vmem:[%s2224_s11 + $0x528] sm:$0xff] }
 0x144   : > { %1715 = vmatmul.mubr.msk.f32.gmra.mxu1 %vm786_vm1, %v785_v31  ;;  %1058 = vmatprep.subr.mxu1 %v903_v41 }
 0x145   : > { %1102 = vmatprep.mubr.f32.mxu1 %v2020_v0  ;;  %1059 = vmatpush1.msra.mxu1 %v902_v43 }
 0x146   : > { %1060 = vmatprep.subr.mxu1 %v899_v45  ;;  %978 = vmatpush1.msra.mxu0 %v884_v58  ;;  %v1262_v58 = vld [vmem:[%s2224_s11 + $0x520] sm:$0xff] }
 0x147   : > { %1061 = vmatpush1.msra.mxu1 %v898_v47  ;;  %979 = vmatprep.subr.mxu0 %v881_v60  ;;  %v1259_v60 = vld [vmem:[%s2224_s11 + $0x508] sm:$0xff] }
 0x148   : > { %1062 = vmatprep.subr.mxu1 %v895_v49  ;;  %980 = vmatpush1.msra.mxu0 %v880_v62  ;;  %v1150_v49 = vld [vmem:[%s2625_s2 + $0x10] sm:$0xff]  ;;  %v2025_v62 = vmov 2  }
 0x149   : > { %1063 = vmatpush1.msra.mxu1 %v894_v51  ;;  %1717 = vmatprep.subr.mxu0 %v2451_v1  ;;  %v1149_v51 = vld [vmem:[%s2625_s2 + $0x8] sm:$0xff] }
 0x14a   : > { %1064 = vmatprep.subr.mxu1 %v891_v53  ;;  %v1148_v53 = vld [vmem:[%s2625_s2] sm:$0xff]  ;;  %1829 = vset.pattern.permute.xlu0 %v2025_v62 }
 0x14b   : > { %1065 = vmatpush1.msra.mxu1 %v890_v55  ;;  %v1264_v55 = vld [vmem:[%s2224_s11 + $0x530] sm:$0xff]  ;;  %1830 = vset.pattern.permute.xlu1 %v2025_v62 }
 0x14c   : > { %1066 = vmatprep.subr.mxu1 %v887_v57  ;;  %v1261_v57 = vld [vmem:[%s2224_s11 + $0x518] sm:$0xff]  ;;  %1272 = vperm.xlu0 %1829, %v2389_v19  }
 0x14d   : > { %1067 = vmatpush1.msra.mxu1 %v886_v59  ;;  %v1260_v59 = vld [vmem:[%s2224_s11 + $0x510] sm:$0xff]  ;;  %1277 = vperm.xlu1 %1830, %v2394_v20  }
 0x14e   : > { %1068 = vmatprep.subr.mxu1 %v883_v61  ;;  %v1258_v61 = vld [vmem:[%s2224_s11 + $0x500] sm:$0xff]  ;;  %s1692_s11 = sshll.u32 %s2086_s25, 9 }
 0x14f   : > { %1069 = vmatpush1.msra.mxu1 %v882_v63  ;;  %v919_v63 = vpop.permute.xlu1 %918  ;;  %s2574_s29 = scalar_lea.hbm %s2629_s6, %s1692_s11 }
 0x150   : > { %1419 = vmatprep.subr.mxu1 %v1265_v54  ;;  %1287 = vperm.xlu0 %1829, %v2406_v4  }
 0x151   : > { %1282 = vperm.xlu1 %1830, %v2401_v3  }
 0x153   : > { %v929_v3 = vpop.permute.xlu1 %928 }
 0x1ef   : > { %v640_v13 = vpop.f32.mrf.mxu1  ;;  %v729_v14 = vpop.f32.mrf.mxu0 }
 0x1f0   : > { %v641_v15 = vadd.f32 %v640_v13, %v557_v10  ;;  %v730_v16 = vadd.f32 %v729_v14, %v557_v10 }
 0x1f1   : > { %v642_v17 = vpop.f32.mrf.mxu1  ;;  %v731_v18 = vpop.f32.mrf.mxu0 }
 0x1f2   : > { %752 = vst [vmem:[%s2467_s0] sm:$0xff] %v641_v15  ;;  %754 = vst [vmem:[%s2467_s0 + $0x10] sm:$0xff] %v730_v16  ;;  %v643_v9 = vadd.f32 %v642_v17, %v557_v10  ;;  %v732_v11 = vadd.f32 %v731_v18, %v557_v10 }
 0x1f3   : > { %v646_v21 = vpop.f32.mrf.mxu1  ;;  %v735_v22 = vpop.f32.mrf.mxu0 }
 0x1f4   : > { %753 = vst [vmem:[%s2467_s0 + $0x8] sm:$0xff] %v643_v9  ;;  %755 = vst [vmem:[%s2467_s0 + $0x18] sm:$0xff] %v732_v11  ;;  %v647_v23 = vadd.f32 %v646_v21, %v562_v12  ;;  %v736_v24 = vadd.f32 %v735_v22, %v562_v12 }
 0x1f5   : > { %v648_v26 = vpop.f32.mrf.mxu1  ;;  %v737_v27 = vpop.f32.mrf.mxu0 }
 0x1f6   : > { %756 = vst [vmem:[%s2467_s0 + $0x20] sm:$0xff] %v647_v23  ;;  %758 = vst [vmem:[%s2467_s0 + $0x30] sm:$0xff] %v736_v24  ;;  %v649_v28 = vadd.f32 %v648_v26, %v562_v12  ;;  %v738_v29 = vadd.f32 %v737_v27, %v562_v12  ;;  %v934_v23 = vpop.permute.xlu1 %933 }
 0x1f8   : > { %v652_v30 = vpop.f32.mrf.mxu1  ;;  %v741_v31 = vpop.f32.mrf.mxu0  ;;  %757 = vst [vmem:[%s2467_s0 + $0x28] sm:$0xff] %v649_v28  ;;  %759 = vst [vmem:[%s2467_s0 + $0x38] sm:$0xff] %v738_v29 }
 0x1f9   : > { %v653_v32 = vadd.f32 %v652_v30, %v567_v25  ;;  %v742_v33 = vadd.f32 %v741_v31, %v567_v25 }
 0x1fa   : > { %v654_v35 = vpop.f32.mrf.mxu1  ;;  %v743_v36 = vpop.f32.mrf.mxu0 }
 0x1fb   : > { %760 = vst [vmem:[%s2467_s0 + $0x40] sm:$0xff] %v653_v32  ;;  %762 = vst [vmem:[%s2467_s0 + $0x50] sm:$0xff] %v742_v33  ;;  %v655_v37 = vadd.f32 %v654_v35, %v567_v25  ;;  %v744_v38 = vadd.f32 %v743_v36, %v567_v25 }
 0x1fc   : > { %v658_v39 = vpop.f32.mrf.mxu1  ;;  %v747_v40 = vpop.f32.mrf.mxu0 }
 0x1fd   : > { %761 = vst [vmem:[%s2467_s0 + $0x48] sm:$0xff] %v655_v37  ;;  %763 = vst [vmem:[%s2467_s0 + $0x58] sm:$0xff] %v744_v38  ;;  %v659_v41 = vadd.f32 %v658_v39, %v572_v34  ;;  %v748_v42 = vadd.f32 %v747_v40, %v572_v34 }
 0x1fe   : > { %v660_v43 = vpop.f32.mrf.mxu1  ;;  %v749_v44 = vpop.f32.mrf.mxu0 }
 0x1ff   : > { %764 = vst [vmem:[%s2467_s0 + $0x60] sm:$0xff] %v659_v41  ;;  %766 = vst [vmem:[%s2467_s0 + $0x70] sm:$0xff] %v748_v42  ;;  %v661_v45 = vadd.f32 %v660_v43, %v572_v34  ;;  %v750_v46 = vadd.f32 %v749_v44, %v572_v34  ;;  %v1278_v41 = vpop.permute.xlu1 %1277 }
 0x200   : > { %v1713_v47 = vpop.f32.mrf.mxu1 }
 0x201   : > { %765 = vst [vmem:[%s2467_s0 + $0x68] sm:$0xff] %v661_v45  ;;  %767 = vst [vmem:[%s2467_s0 + $0x78] sm:$0xff] %v750_v46 }
 0x202   : > { %v861_v48 = vpop.f32.mrf.mxu1 }
 0x203   : > { %1635 = vmatmul.mubr.msk.f32.vlgmr.msra.gmra.mxu0 %vm936_vm2, %v861_v48  ;;  %1639 = vmatmul.mubr.msk.f32.vlgmr.msra.gmra.mxu1 %vm936_vm2, %v861_v48 }
 0x204   : > { %1718 = vmatpush3.msra.mxu0 %v2451_v1  ;;  %1019 = vmatprep.mubr.f32.mxu0 %v2020_v0  ;;  %v1716_v50 = vpop.f32.mrf.mxu1 }
 0x205   : > { %1108 = vmatprep.mubr.f32.mxu1 %v2020_v0  ;;  %1719 = vmatprep.subr.mxu0 %v1150_v49 }
 0x206   : > { %1720 = vmatpush3.msra.mxu0 %v1150_v49  ;;  %v871_v52 = vpop.f32.mrf.mxu1  ;;  %1420 = vmatpush1.msra.mxu1 %v1264_v55 }
 0x207   : > { %1636 = vmatmul.mubr.msk.f32.gmra.mxu0 %vm936_vm2, %v1713_v47  ;;  %1640 = vmatmul.mubr.msk.f32.gmra.mxu1 %vm936_vm2, %v1713_v47 }
 0x208   : > { %1025 = vmatprep.mubr.f32.mxu0 %v2020_v0  ;;  %1114 = vmatprep.mubr.f32.mxu1 %v2020_v0 }
 0x209   : > { %1721 = vmatprep.subr.mxu0 %v1149_v51  ;;  %1421 = vmatprep.subr.mxu1 %v1261_v57 }
 0x20a   : > { %1722 = vmatpush3.msra.mxu0 %v1149_v51  ;;  %1422 = vmatpush1.msra.mxu1 %v1260_v59 }
 0x20b   : > { %1637 = vmatmul.mubr.msk.f32.gmra.mxu0 %vm936_vm2, %v871_v52  ;;  %1641 = vmatmul.mubr.msk.f32.gmra.mxu1 %vm936_vm2, %v871_v52 }
 0x20c   : > { %1031 = vmatprep.mubr.f32.mxu0 %v2020_v0  ;;  %1120 = vmatprep.mubr.f32.mxu1 %v2020_v0 }
 0x20d   : > { %1723 = vmatprep.subr.mxu0 %v1148_v53 }
 0x20e   : > { %1724 = vmatpush3.msra.mxu0 %v1148_v53  ;;  %v1283_v53 = vpop.permute.xlu1 %1282 }
 0x20f   : > { %1638 = vmatmul.mubr.msk.f32.gmra.mxu0 %vm936_vm2, %v1716_v50  ;;  %1642 = vmatmul.mubr.msk.f32.gmra.mxu1 %vm936_vm2, %v1716_v50 }
 0x210   : > { %1725 = vmatprep.mubr.msk.f32.mxu0 %vm1164_vm3, %v2458_v5  ;;  %1455 = vmatprep.mubr.f32.mxu1 %v2020_v0 }
 0x211   : > { %1330 = vmatprep.subr.mxu0 %v1263_v56 }
 0x213   : > { %1726 = vmatmul.mubr.msk.f32.vlgmr.msra.gmra.mxu0 %vm1164_vm3, %v2460_v6 }
 0x214   : > { %1728 = vmatprep.mubr.msk.f32.mxu0 %vm1164_vm3, %v2462_v7  ;;  %1331 = vmatpush1.msra.mxu0 %v1262_v58  ;;  %v924_v7 = vpop.permute.xlu0 %923 }
 0x215   : > { %1332 = vmatprep.subr.mxu0 %v1259_v60 }
 0x216   : > { %1333 = vmatpush1.msra.mxu0 %v1258_v61 }
 0x217   : > { %1729 = vmatmul.mubr.msk.f32.gmra.mxu0 %vm1164_vm3, %v2464_v8 }
 0x218   : > { %1366 = vmatprep.mubr.f32.mxu0 %v2020_v0  ;;  %v1273_v40 = vpop.permute.xlu0 %1272 }
 0x2c3   : > { %v1015_v1 = vpop.f32.mrf.mxu0  ;;  %v1104_v2 = vpop.f32.mrf.mxu1 }
 0x2c4   : > { %v1016_v5 = vadd.f32 %v1015_v1, %v919_v63  ;;  %v1105_v6 = vadd.f32 %v1104_v2, %v919_v63  ;;  %v1288_v1 = vpop.permute.xlu0 %1287 }
 0x2c5   : > { %v1017_v8 = vpop.f32.mrf.mxu0  ;;  %v1106_v10 = vpop.f32.mrf.mxu1 }
 0x2c6   : > { %1643 = vst [vmem:[%s2467_s0 + $0x80] sm:$0xff] %v1016_v5  ;;  %1645 = vst [vmem:[%s2467_s0 + $0x90] sm:$0xff] %v1105_v6  ;;  %v1018_v19 = vadd.f32 %v1017_v8, %v919_v63  ;;  %v1107_v20 = vadd.f32 %v1106_v10, %v919_v63 }
 0x2c7   : > { %v1021_v4 = vpop.f32.mrf.mxu0  ;;  %v1110_v12 = vpop.f32.mrf.mxu1 }
 0x2c8   : > { %1644 = vst [vmem:[%s2467_s0 + $0x88] sm:$0xff] %v1018_v19  ;;  %1646 = vst [vmem:[%s2467_s0 + $0x98] sm:$0xff] %v1107_v20  ;;  %v1022_v13 = vadd.f32 %v1021_v4, %v924_v7  ;;  %v1111_v14 = vadd.f32 %v1110_v12, %v924_v7 }
 0x2c9   : > { %v1023_v15 = vpop.f32.mrf.mxu0  ;;  %v1112_v16 = vpop.f32.mrf.mxu1 }
 0x2ca   : > { %1647 = vst [vmem:[%s2467_s0 + $0xa0] sm:$0xff] %v1022_v13  ;;  %1649 = vst [vmem:[%s2467_s0 + $0xb0] sm:$0xff] %v1111_v14  ;;  %v1024_v17 = vadd.f32 %v1023_v15, %v924_v7  ;;  %v1113_v18 = vadd.f32 %v1112_v16, %v924_v7 }
 0x2cb   : > { %v1027_v9 = vpop.f32.mrf.mxu0  ;;  %v1116_v11 = vpop.f32.mrf.mxu1 }
 0x2cc   : > { %1648 = vst [vmem:[%s2467_s0 + $0xa8] sm:$0xff] %v1024_v17  ;;  %1650 = vst [vmem:[%s2467_s0 + $0xb8] sm:$0xff] %v1113_v18  ;;  %v1028_v21 = vadd.f32 %v1027_v9, %v929_v3  ;;  %v1117_v22 = vadd.f32 %v1116_v11, %v929_v3 }
 0x2cd   : > { %v1029_v24 = vpop.f32.mrf.mxu0  ;;  %v1118_v25 = vpop.f32.mrf.mxu1 }
 0x2ce   : > { %1651 = vst [vmem:[%s2467_s0 + $0xc0] sm:$0xff] %v1028_v21  ;;  %1653 = vst [vmem:[%s2467_s0 + $0xd0] sm:$0xff] %v1117_v22  ;;  %v1030_v26 = vadd.f32 %v1029_v24, %v929_v3  ;;  %v1119_v27 = vadd.f32 %v1118_v25, %v929_v3 }
 0x2cf   : > { %v1033_v28 = vpop.f32.mrf.mxu0  ;;  %v1122_v29 = vpop.f32.mrf.mxu1 }
 0x2d0   : > { %1652 = vst [vmem:[%s2467_s0 + $0xc8] sm:$0xff] %v1030_v26  ;;  %1654 = vst [vmem:[%s2467_s0 + $0xd8] sm:$0xff] %v1119_v27  ;;  %v1034_v30 = vadd.f32 %v1033_v28, %v934_v23  ;;  %v1123_v31 = vadd.f32 %v1122_v29, %v934_v23 }
 0x2d1   : > { %v1035_v32 = vpop.f32.mrf.mxu0  ;;  %v1124_v33 = vpop.f32.mrf.mxu1 }
 0x2d2   : > { %1655 = vst [vmem:[%s2467_s0 + $0xe0] sm:$0xff] %v1034_v30  ;;  %1657 = vst [vmem:[%s2467_s0 + $0xf0] sm:$0xff] %v1123_v31  ;;  %v1036_v34 = vadd.f32 %v1035_v32, %v934_v23  ;;  %v1125_v35 = vadd.f32 %v1124_v33, %v934_v23 }
 0x2d3   : > { %v1727_v36 = vpop.f32.mrf.mxu0 }
 0x2d4   : > { %1656 = vst [vmem:[%s2467_s0 + $0xe8] sm:$0xff] %v1036_v34  ;;  %1658 = vst [vmem:[%s2467_s0 + $0xf8] sm:$0xff] %v1125_v35 }
 0x2d5   : > { %v1239_v37 = vpop.f32.mrf.mxu0 }
 0x2d6   : > { %1663 = vmatmul.mubr.msk.f32.vlgmr.msra.gmra.mxu0 %vm786_vm1, %v1239_v37  ;;  %1667 = vmatmul.mubr.msk.f32.vlgmr.msra.gmra.mxu1 %vm786_vm1, %v1239_v37 }
 0x2d7   : > { %1372 = vmatprep.mubr.f32.mxu0 %v2020_v0  ;;  %1461 = vmatprep.mubr.f32.mxu1 %v2020_v0  ;;  %v1730_v38 = vpop.f32.mrf.mxu0 }
 0x2d9   : > { %v1249_v39 = vpop.f32.mrf.mxu0 }
 0x2da   : > { %1664 = vmatmul.mubr.msk.f32.gmra.mxu0 %vm786_vm1, %v1727_v36  ;;  %1668 = vmatmul.mubr.msk.f32.gmra.mxu1 %vm786_vm1, %v1727_v36 }
 0x2db   : > { %1378 = vmatprep.mubr.f32.mxu0 %v2020_v0  ;;  %1467 = vmatprep.mubr.f32.mxu1 %v2020_v0 }
 0x2de   : > { %1665 = vmatmul.mubr.msk.f32.gmra.mxu0 %vm786_vm1, %v1249_v39  ;;  %1669 = vmatmul.mubr.msk.f32.gmra.mxu1 %vm786_vm1, %v1249_v39 }
 0x2df   : > { %1384 = vmatprep.mubr.f32.mxu0 %v2020_v0  ;;  %1473 = vmatprep.mubr.f32.mxu1 %v2020_v0 }
 0x2e2   : > { %1666 = vmatmul.mubr.msk.f32.gmra.mxu0 %vm786_vm1, %v1730_v38  ;;  %1670 = vmatmul.mubr.msk.f32.gmra.mxu1 %vm786_vm1, %v1730_v38 }
 0x396   : > { %v1368_v42 = vpop.f32.mrf.mxu0  ;;  %v1457_v43 = vpop.f32.mrf.mxu1 }
 0x397   : > { %v1369_v44 = vadd.f32 %v1368_v42, %v1273_v40  ;;  %v1458_v45 = vadd.f32 %v1457_v43, %v1273_v40 }
 0x398   : > { %v1370_v46 = vpop.f32.mrf.mxu0  ;;  %v1459_v47 = vpop.f32.mrf.mxu1 }
 0x399   : > { %1671 = vst [vmem:[%s2467_s0 + $0x100] sm:$0xff] %v1369_v44  ;;  %1673 = vst [vmem:[%s2467_s0 + $0x110] sm:$0xff] %v1458_v45  ;;  %v1371_v48 = vadd.f32 %v1370_v46, %v1273_v40  ;;  %v1460_v0 = vadd.f32 %v1459_v47, %v1273_v40 }
 0x39a   : > { %v1374_v49 = vpop.f32.mrf.mxu0  ;;  %v1463_v50 = vpop.f32.mrf.mxu1 }
 0x39b   : > { %1672 = vst [vmem:[%s2467_s0 + $0x108] sm:$0xff] %v1371_v48  ;;  %1674 = vst [vmem:[%s2467_s0 + $0x118] sm:$0xff] %v1460_v0  ;;  %v1375_v51 = vadd.f32 %v1374_v49, %v1278_v41  ;;  %v1464_v52 = vadd.f32 %v1463_v50, %v1278_v41 }
 0x39c   : > { %v1376_v54 = vpop.f32.mrf.mxu0  ;;  %v1465_v55 = vpop.f32.mrf.mxu1 }
 0x39d   : > { %1675 = vst [vmem:[%s2467_s0 + $0x120] sm:$0xff] %v1375_v51  ;;  %1677 = vst [vmem:[%s2467_s0 + $0x130] sm:$0xff] %v1464_v52  ;;  %v1377_v56 = vadd.f32 %v1376_v54, %v1278_v41  ;;  %v1466_v57 = vadd.f32 %v1465_v55, %v1278_v41 }
 0x39e   : > { %v1380_v58 = vpop.f32.mrf.mxu0  ;;  %v1469_v59 = vpop.f32.mrf.mxu1 }
 0x39f   : > { %1676 = vst [vmem:[%s2467_s0 + $0x128] sm:$0xff] %v1377_v56  ;;  %1678 = vst [vmem:[%s2467_s0 + $0x138] sm:$0xff] %v1466_v57  ;;  %v1381_v60 = vadd.f32 %v1380_v58, %v1283_v53  ;;  %v1470_v61 = vadd.f32 %v1469_v59, %v1283_v53 }
 0x3a0   : > { %v1382_v62 = vpop.f32.mrf.mxu0  ;;  %v1471_v63 = vpop.f32.mrf.mxu1 }
 0x3a1   : > { %1679 = vst [vmem:[%s2467_s0 + $0x140] sm:$0xff] %v1381_v60  ;;  %1681 = vst [vmem:[%s2467_s0 + $0x150] sm:$0xff] %v1470_v61  ;;  %v1383_v2 = vadd.f32 %v1382_v62, %v1283_v53  ;;  %v1472_v5 = vadd.f32 %v1471_v63, %v1283_v53 }
 0x3a2   : > { %v1386_v6 = vpop.f32.mrf.mxu0  ;;  %v1475_v7 = vpop.f32.mrf.mxu1 }
 0x3a3   : > { %1680 = vst [vmem:[%s2467_s0 + $0x148] sm:$0xff] %v1383_v2  ;;  %1682 = vst [vmem:[%s2467_s0 + $0x158] sm:$0xff] %v1472_v5  ;;  %v1387_v8 = vadd.f32 %v1386_v6, %v1288_v1  ;;  %v1476_v10 = vadd.f32 %v1475_v7, %v1288_v1 }
 0x3a4   : > { %v1388_v19 = vpop.f32.mrf.mxu0  ;;  %v1477_v20 = vpop.f32.mrf.mxu1 }
 0x3a5   : > { %1683 = vst [vmem:[%s2467_s0 + $0x160] sm:$0xff] %v1387_v8  ;;  %1685 = vst [vmem:[%s2467_s0 + $0x170] sm:$0xff] %v1476_v10  ;;  %v1389_v3 = vadd.f32 %v1388_v19, %v1288_v1  ;;  %v1478_v4 = vadd.f32 %v1477_v20, %v1288_v1 }
 0x3a7   : > { %1684 = vst [vmem:[%s2467_s0 + $0x168] sm:$0xff] %v1389_v3  ;;  %1686 = vst [vmem:[%s2467_s0 + $0x178] sm:$0xff] %v1478_v4 }
 0x3a8   : > { %1950 = shalt.err (!%p1947_p10)
}
 0x3a9   : > { %s1951_s0 = scalar_lea.hbm %s2574_s29, 6144  ;;  %s1955_s8 = scalar_lea.hbm %s2629_s6, 12288 }
 0x3aa   : > { %p1952_p2 = scmp.ne.s32.totalorder %s2574_s29, %s1951_s0  ;;  %p1956_p6 = scmp.lt.s32.totalorder %s2574_s29, %s2629_s6 }
 0x3ab   : > { %p1957_p13 = scmp.lt.s32.totalorder %s1955_s8, %s1951_s0 }
 0x3ac   : > { %p1953_p1 = pnand %p1952_p2, %p2651_p4 }
 0x3ad   : > { %p1958_p8 = por %p1957_p13, %p1956_p6 }
 0x3ae   : > { %p1954_p5 = pneg %p1953_p1 }
 0x3b0   : > { %p1959_p3 = pnand %p1958_p8, %p1954_p5 }
 0x3b2   : > { %1962 = shalt.err (!%p1959_p3)
}
 0x3b3   : > { %s2027_s26 = smov 512   ;;  %s2028_s11 = smov 1024  }
 0x3b4   : > { %s2029_s17 = smov 32  }
 0x3b5   : > { %1748 = dma.vmem_to_hbm [thread:$0]  (%p2651_p4), %s2576_s7, 6144, %s2574_s29, %s1498_s12, %s2027_s26, %s2028_s11, %s2029_s17  }
 0x3b6 PF: > { %s1526_s25 = sand.u32 1, %s1997_s21   ;;  %p2652_p11 = scmp.ne.s32.totalorder %s2639_s10, 0 }
 0x3b7   : > { %p2653_p0 = scmp.ge.s32.totalorder %s2009_s24, 2  ;;  %s1527_s13 = scalar_lea.sflag [#allocation4], %s1526_s25 }
 0x3b9   : > { %p1765_p12 = pnand %p2653_p0, %p2652_p11 }
 0x3bb   : > { %p1766_p9 = pneg %p1765_p12 }
 0x3bd   : > { %1992 = dma.done.wait (%p1766_p9), %s1527_s13, 6144  }
 0x3be   : > { %1994 = vsyncadd (%p1766_p9), %s1527_s13, 4294961152  ;;  %p21_p7 = scmp.ge.s32.totalorder %s2090_s27, 4   ;;  %s2654_s21 = smov %s2001_s22 }
 0x3bf   : > { %s2655_s22 = smov %s2005_s23  ;;  %s2656_s23 = smov %s2102_s30 }
 0x3c0   : > { %s2657_s24 = smov %s2090_s27  ;;  %23 = sbr.rel (!%p21_p7) target bundleno = 10 (0xa), region = 104 }
 0x3c5   :  { %1532 = vsyncpa [#allocation3], 1 }
 0x3c6   :  { %1534 = vsyncpa [#allocation3 + $0x1], 1 }
 0x3c7   :  { %1535 = vsyncpa [#allocation6], 1 }
 0x3c8   :  { %1536 = vsyncpa [#allocation9], 1 }
 0x3c9   :  { %1538 = vsyncpa [#allocation9 + $0x1], 1 }
 0x3ca   :  { %1539 = vsyncpa [#allocation4], 1 }
 0x3cb   :  { %1541 = vsyncpa [#allocation4 + $0x1], 1 }

</bundles_post_ra>
